<compile_context>
chip_gen: v5e
topology: v5e:2x2
jax: 0.10.0
libtpu: 0.0.40
codegen_flags: <defaults>
</compile_context>

<pallas_src>
import functools

import numpy as np
import jax
import jax.numpy as jnp
from jax import lax
from jax.experimental import pallas as pl
from jax.experimental.pallas import tpu as pltpu

EPS = 1e-5
SLOPE = 0.01  # nn.LeakyReLU default negative_slope


# --------------------------- wrapper-side constant packing ---------------------------
def _pack_deconv_weight(w, dtype):
    # torch ConvTranspose1d weight (Cin, Cout, K=4) -> (4*Cout, Cin), tap-major rows.
    return jnp.concatenate([w[:, :, k].T for k in range(4)], axis=0).astype(dtype)


def _scatter_matrix(B, L, dtype):
    """Tap-major, batch-block-diagonal placement matrix, shape (4*B*L, B*2L).

    S[k*B*L + b*L + i, b*2L + t] = 1  iff  t == 2*i + k - 1
    (ConvTranspose1d k=4, s=2, p=1).  Entries are 0/1 so matmul_dtype is exact."""
    G = np.zeros((4, L, 2 * L), np.float32)
    for k in range(4):
        for i in range(L):
            t = 2 * i + k - 1
            if 0 <= t < 2 * L:
                G[k, i, t] = 1.0
    S = np.zeros((4, B, L, B, 2 * L), np.float32)
    for b in range(B):
        S[:, b, :, b, :] = G
    return jnp.asarray(S.reshape(4 * B * L, B * 2 * L), dtype)


def _pack_channel_params(params, cin, cmid, ccls):
    """One (Cmax, 8) f32 tile: cols = [g1, be1, g2, be2, g3, be3, bc, unused]."""
    cmax = max(cin, cmid, ccls)
    pp = np.zeros((cmax, 8), np.float32)
    pp[:cin, 0] = np.asarray(params["g1"], np.float32)
    pp[:cin, 1] = np.asarray(params["be1"], np.float32)
    pp[:cmid, 2] = np.asarray(params["g2"], np.float32)
    pp[:cmid, 3] = np.asarray(params["be2"], np.float32)
    pp[:cmid, 4] = np.asarray(params["g3"], np.float32)
    pp[:cmid, 5] = np.asarray(params["be3"], np.float32)
    pp[:ccls, 6] = np.asarray(params["bc"], np.float32)
    return jnp.asarray(pp)


# --------------------------------- the fused kernel ----------------------------------
def _decoder_kernel(x_ref, w1, w2, w3, wc, s1, s2, s3, pp_ref, o_ref,
                    *, cin, cmid, ccls, matmul_dtype):
    """Everything lives in VMEM (shapes are small); single grid point."""

    def layer(x, w_ref, s_ref, cout, gamma, beta):
        # x: (c_in_cur, B*L) matmul_dtype; w_ref: (4*cout, c_in_cur); s_ref: (4*B*L, B*2L)
        bl = x.shape[1]
        # One fused matmul for all 4 taps.
        t = jnp.dot(w_ref[...], x, preferred_element_type=jnp.float32)   # (4*cout, BL)
        t = t.astype(matmul_dtype)                                       # MXU fast path
        # Stride-2 scatter (tap placement + boundary masking) on the MXU.
        y = jnp.dot(t[0:cout, :], s_ref[0:bl, :],
                    preferred_element_type=jnp.float32)                  # (cout, 2*BL)
        for k in range(1, 4):
            y = y + jnp.dot(t[k * cout:(k + 1) * cout, :],
                            s_ref[k * bl:(k + 1) * bl, :],
                            preferred_element_type=jnp.float32)
        # Deconv bias omitted: cancelled exactly by training-mode BN mean subtraction.
        # Training-mode BatchNorm1d (stats over batch & length == lane axis) + LeakyReLU,
        # fused into one FMA + max.  All element-wise math in f32.
        mean = jnp.mean(y, axis=1, keepdims=True)                        # (cout, 1)
        yc = y - mean
        var = jnp.mean(yc * yc, axis=1, keepdims=True)
        scale = gamma * lax.rsqrt(var + EPS)
        shift = beta - mean * scale
        yn = y * scale + shift
        act = jnp.maximum(yn, SLOPE * yn)                                # LeakyReLU
        return act.astype(matmul_dtype)

    x = x_ref[...]                                                       # (Cin, B*L)
    x = layer(x, w1, s1, cin,  pp_ref[0:cin, 0:1],  pp_ref[0:cin, 1:2])
    x = layer(x, w2, s2, cmid, pp_ref[0:cmid, 2:3], pp_ref[0:cmid, 3:4])
    x = layer(x, w3, s3, cmid, pp_ref[0:cmid, 4:5], pp_ref[0:cmid, 5:6])

    # classifier: Conv1d kernel_size=1 == channel matmul + bias; single lane-dense store.
    out = jnp.dot(wc[...], x, preferred_element_type=jnp.float32) + pp_ref[0:ccls, 6:7]
    o_ref[...] = out.astype(o_ref.dtype)


# ------------------------------------- wrapper ---------------------------------------
def basic_decoder_forward(x_ncl, params, matmul_dtype=jnp.bfloat16):
    """x_ncl: (B, C_in, L) like the PyTorch module. Returns (B, C_out, 8*L) f32."""
    B, cin, L = x_ncl.shape
    cmid = cin // 2
    ccls = params["wc"].shape[0]
    Lout = 8 * L

    # (B, Cin, L) -> (Cin, B*L) batch-major columns; cast once here.
    x_flat = jnp.transpose(x_ncl, (1, 0, 2)).reshape(cin, B * L).astype(matmul_dtype)

    args = [
        x_flat,
        _pack_deconv_weight(params["w1"], matmul_dtype),
        _pack_deconv_weight(params["w2"], matmul_dtype),
        _pack_deconv_weight(params["w3"], matmul_dtype),
        params["wc"][:, :, 0].astype(matmul_dtype),
        _scatter_matrix(B, L, matmul_dtype),
        _scatter_matrix(B, 2 * L, matmul_dtype),
        _scatter_matrix(B, 4 * L, matmul_dtype),
        _pack_channel_params(params, cin, cmid, ccls),
    ]

    # Advisory cost estimate: tap matmuls + scatter matmuls + classifier.
    flops = 0
    for ci, co, l in ((cin, cin, L), (cin, cmid, 2 * L), (cmid, cmid, 4 * L)):
        bl = B * l
        flops += 2 * (4 * co) * ci * bl          # fused tap matmul
        flops += 4 * 2 * co * bl * (2 * bl)      # 4 scatter matmuls
    flops += 2 * ccls * cmid * B * Lout
    bytes_accessed = sum(int(a.size) * int(a.dtype.itemsize) for a in args)
    bytes_accessed += ccls * B * Lout * 4
    cost = pl.CostEstimate(flops=int(flops),
                           transcendentals=int(cin + 2 * cmid),
                           bytes_accessed=int(bytes_accessed))

    kernel = functools.partial(_decoder_kernel, cin=cin, cmid=cmid, ccls=ccls,
                               matmul_dtype=matmul_dtype)
    out_flat = pl.pallas_call(
        kernel,
        out_shape=jax.ShapeDtypeStruct((ccls, B * Lout), jnp.float32),
        in_specs=[pl.BlockSpec(memory_space=pltpu.MemorySpace.VMEM)] * len(args),
        out_specs=pl.BlockSpec(memory_space=pltpu.MemorySpace.VMEM),
        compiler_params=pltpu.CompilerParams(vmem_limit_bytes=32 * 1024 * 1024),
        cost_estimate=cost,
    )(*args)

    # Back to PyTorch NCL: (ccls, B*Lout) -> (B, ccls, Lout).
    return jnp.transpose(out_flat.reshape(ccls, B, Lout), (1, 0, 2))


# ---------------------------------- params / reference -------------------------------
def init_params(key, in_channels, out_channels):
    """Parameters stored in PyTorch layouts (ConvTranspose1d: (Cin, Cout, K))."""
    cmid = in_channels // 2
    ks = jax.random.split(key, 8)
    s = 0.1
    return {
        "w1": s * jax.random.normal(ks[0], (in_channels, in_channels, 4), jnp.float32),
        "b1": s * jax.random.normal(ks[1], (in_channels,), jnp.float32),
        "g1": jnp.ones((in_channels,), jnp.float32),
        "be1": jnp.zeros((in_channels,), jnp.float32),
        "w2": s * jax.random.normal(ks[2], (in_channels, cmid, 4), jnp.float32),
        "b2": s * jax.random.normal(ks[3], (cmid,), jnp.float32),
        "g2": jnp.ones((cmid,), jnp.float32),
        "be2": jnp.zeros((cmid,), jnp.float32),
        "w3": s * jax.random.normal(ks[4], (cmid, cmid, 4), jnp.float32),
        "b3": s * jax.random.normal(ks[5], (cmid,), jnp.float32),
        "g3": jnp.ones((cmid,), jnp.float32),
        "be3": jnp.zeros((cmid,), jnp.float32),
        "wc": s * jax.random.normal(ks[6], (out_channels, cmid, 1), jnp.float32),
        "bc": s * jax.random.normal(ks[7], (out_channels,), jnp.float32),
    }


def ref_forward(x, p):
    """Pure-numpy reference (NCL, mirrors PyTorch semantics incl. deconv biases)."""
    x = np.asarray(x, np.float32)
    pn = {k: np.asarray(v, np.float32) for k, v in p.items()}

    def deconv(x, w, b):  # x (B,Cin,L), w (Cin,Cout,4), b (Cout,)
        B, Cin, L = x.shape
        Cout = w.shape[1]
        out = np.zeros((B, Cout, 2 * L), np.float32)
        for k in range(4):
            for i in range(L):
                t = 2 * i + k - 1
                if 0 <= t < 2 * L:
                    out[:, :, t] += x[:, :, i] @ w[:, :, k]
        return out + b.reshape(1, Cout, 1)

    def bn_lrelu(x, g, be):
        mean = x.mean(axis=(0, 2), keepdims=True)
        var = ((x - mean) ** 2).mean(axis=(0, 2), keepdims=True)
        y = (x - mean) / np.sqrt(var + EPS)
        y = y * g.reshape(1, -1, 1) + be.reshape(1, -1, 1)
        return np.where(y >= 0, y, SLOPE * y)

    x = bn_lrelu(deconv(x, pn["w1"], pn["b1"]), pn["g1"], pn["be1"])
    x = bn_lrelu(deconv(x, pn["w2"], pn["b2"]), pn["g2"], pn["be2"])
    x = bn_lrelu(deconv(x, pn["w3"], pn["b3"]), pn["g3"], pn["be3"])
    out = np.einsum("oc,bcl->bol", pn["wc"][:, :, 0], x) + pn["bc"].reshape(1, -1, 1)
    return out


if __name__ == "__main__":
    B, IN_CH, OUT_CH, L = 2, 8, 4, 8
    key = jax.random.PRNGKey(0)
    kx, kp = jax.random.split(key)
    x = jax.random.normal(kx, (B, IN_CH, L), jnp.float32)  # NCL, like PyTorch
    params = init_params(kp, IN_CH, OUT_CH)

    ref = ref_forward(np.asarray(x), params)

    # f32 MXU operands: tight match with the numpy reference.
    out_f32 = jax.block_until_ready(
        basic_decoder_forward(x, params, matmul_dtype=jnp.float32))
    assert out_f32.shape == (B, OUT_CH, 8 * L), out_f32.shape
    np.testing.assert_allclose(np.asarray(out_f32), ref, rtol=2e-3, atol=2e-3)

    # bf16 MXU operands (v6e/v7x fast path) with f32 accumulation and f32 BN/LeakyReLU
    # math: relaxed tolerance (accepted accuracy contract for the bf16 path).
    out_bf16 = jax.block_until_ready(
        basic_decoder_forward(x, params, matmul_dtype=jnp.bfloat16))
    assert out_bf16.shape == (B, OUT_CH, 8 * L), out_bf16.shape
    np.testing.assert_allclose(np.asarray(out_bf16), ref, rtol=6e-2, atol=6e-2)

    print("KERNEL_OK")
</pallas_src>

<mosaic_0001>
module attributes {stable_mosaic.version = 11 : i64} {
  func.func @_decoder_kernel(%arg0: memref<8x16xf32, #tpu.memory_space<vmem>>, %arg1: memref<32x8xf32, #tpu.memory_space<vmem>>, %arg2: memref<16x8xf32, #tpu.memory_space<vmem>>, %arg3: memref<16x4xf32, #tpu.memory_space<vmem>>, %arg4: memref<4x4xf32, #tpu.memory_space<vmem>>, %arg5: memref<64x32xf32, #tpu.memory_space<vmem>>, %arg6: memref<128x64xf32, #tpu.memory_space<vmem>>, %arg7: memref<256x128xf32, #tpu.memory_space<vmem>>, %arg8: memref<8x8xf32, #tpu.memory_space<vmem>>, %arg9: memref<4x128xf32, #tpu.memory_space<vmem>>) attributes {dimension_semantics = [], scalar_prefetch = 0 : i64, scratch_operands = 0 : i64, tpu.core_type = #tpu.core_type<tc>} {
    %c0 = arith.constant 0 : index
    %c0_0 = arith.constant 0 : index
    %0 = vector.load %arg0[%c0, %c0_0] : memref<8x16xf32, #tpu.memory_space<vmem>>, vector<8x16xf32>
    %c0_1 = arith.constant 0 : index
    %c0_2 = arith.constant 0 : index
    %1 = vector.load %arg8[%c0_1, %c0_2] : memref<8x8xf32, #tpu.memory_space<vmem>>, vector<8x1xf32>
    %c0_3 = arith.constant 0 : index
    %c1 = arith.constant 1 : index
    %2 = vector.load %arg8[%c0_3, %c1] : memref<8x8xf32, #tpu.memory_space<vmem>>, vector<8x1xf32>
    %c0_4 = arith.constant 0 : index
    %c0_5 = arith.constant 0 : index
    %3 = vector.load %arg1[%c0_4, %c0_5] : memref<32x8xf32, #tpu.memory_space<vmem>>, vector<32x8xf32>
    %cst = arith.constant dense<0.000000e+00> : vector<32x16xf32>
    %4 = tpu.matmul %3, %0, %cst {dimension_numbers = #tpu.dot_dimension_numbers<[1], [0], [0], [1], [0, 0, 1, 1], [], []>} : vector<32x8xf32>, vector<8x16xf32>, vector<32x16xf32> -> vector<32x16xf32>
    %5 = vector.extract_strided_slice %4 {offsets = [0, 0], sizes = [8, 16], strides = [1, 1]} : vector<32x16xf32> to vector<8x16xf32>
    %c0_6 = arith.constant 0 : index
    %c0_7 = arith.constant 0 : index
    %6 = vector.load %arg5[%c0_6, %c0_7] : memref<64x32xf32, #tpu.memory_space<vmem>>, vector<16x32xf32>
    %cst_8 = arith.constant dense<0.000000e+00> : vector<8x32xf32>
    %7 = tpu.matmul %5, %6, %cst_8 {dimension_numbers = #tpu.dot_dimension_numbers<[1], [0], [0], [1], [0, 0, 1, 1], [], []>} : vector<8x16xf32>, vector<16x32xf32>, vector<8x32xf32> -> vector<8x32xf32>
    %8 = vector.extract_strided_slice %4 {offsets = [8, 0], sizes = [8, 16], strides = [1, 1]} : vector<32x16xf32> to vector<8x16xf32>
    %c16 = arith.constant 16 : index
    %c0_9 = arith.constant 0 : index
    %9 = vector.load %arg5[%c16, %c0_9] : memref<64x32xf32, #tpu.memory_space<vmem>>, vector<16x32xf32>
    %cst_10 = arith.constant dense<0.000000e+00> : vector<8x32xf32>
    %10 = tpu.matmul %8, %9, %cst_10 {dimension_numbers = #tpu.dot_dimension_numbers<[1], [0], [0], [1], [0, 0, 1, 1], [], []>} : vector<8x16xf32>, vector<16x32xf32>, vector<8x32xf32> -> vector<8x32xf32>
    %11 = arith.addf %7, %10 : vector<8x32xf32>
    %12 = vector.extract_strided_slice %4 {offsets = [16, 0], sizes = [8, 16], strides = [1, 1]} : vector<32x16xf32> to vector<8x16xf32>
    %c32 = arith.constant 32 : index
    %c0_11 = arith.constant 0 : index
    %13 = vector.load %arg5[%c32, %c0_11] : memref<64x32xf32, #tpu.memory_space<vmem>>, vector<16x32xf32>
    %cst_12 = arith.constant dense<0.000000e+00> : vector<8x32xf32>
    %14 = tpu.matmul %12, %13, %cst_12 {dimension_numbers = #tpu.dot_dimension_numbers<[1], [0], [0], [1], [0, 0, 1, 1], [], []>} : vector<8x16xf32>, vector<16x32xf32>, vector<8x32xf32> -> vector<8x32xf32>
    %15 = arith.addf %11, %14 : vector<8x32xf32>
    %16 = vector.extract_strided_slice %4 {offsets = [24, 0], sizes = [8, 16], strides = [1, 1]} : vector<32x16xf32> to vector<8x16xf32>
    %c48 = arith.constant 48 : index
    %c0_13 = arith.constant 0 : index
    %17 = vector.load %arg5[%c48, %c0_13] : memref<64x32xf32, #tpu.memory_space<vmem>>, vector<16x32xf32>
    %cst_14 = arith.constant dense<0.000000e+00> : vector<8x32xf32>
    %18 = tpu.matmul %16, %17, %cst_14 {dimension_numbers = #tpu.dot_dimension_numbers<[1], [0], [0], [1], [0, 0, 1, 1], [], []>} : vector<8x16xf32>, vector<16x32xf32>, vector<8x32xf32> -> vector<8x32xf32>
    %19 = arith.addf %15, %18 : vector<8x32xf32>
    %cst_15 = arith.constant dense<0.000000e+00> : vector<8xf32>
    %20 = vector.multi_reduction <add>, %19, %cst_15 [1] : vector<8x32xf32> to vector<8xf32>
    %21 = vector.shape_cast %20 : vector<8xf32> to vector<8x1xf32>
    %cst_16 = arith.constant 3.200000e+01 : f32
    %22 = vector.broadcast %cst_16 : f32 to vector<8x1xf32>
    %23 = arith.divf %21, %22 : vector<8x1xf32>
    %24 = vector.broadcast %23 : vector<8x1xf32> to vector<8x32xf32>
    %25 = arith.subf %19, %24 : vector<8x32xf32>
    %26 = arith.mulf %25, %25 : vector<8x32xf32>
    %cst_17 = arith.constant dense<0.000000e+00> : vector<8xf32>
    %27 = vector.multi_reduction <add>, %26, %cst_17 [1] : vector<8x32xf32> to vector<8xf32>
    %28 = vector.shape_cast %27 : vector<8xf32> to vector<8x1xf32>
    %cst_18 = arith.constant 3.200000e+01 : f32
    %29 = vector.broadcast %cst_18 : f32 to vector<8x1xf32>
    %30 = arith.divf %28, %29 : vector<8x1xf32>
    %cst_19 = arith.constant 9.99999974E-6 : f32
    %31 = vector.broadcast %cst_19 : f32 to vector<8x1xf32>
    %32 = arith.addf %30, %31 : vector<8x1xf32>
    %33 = math.rsqrt %32 : vector<8x1xf32>
    %34 = arith.mulf %1, %33 : vector<8x1xf32>
    %35 = arith.mulf %23, %34 : vector<8x1xf32>
    %36 = arith.subf %2, %35 : vector<8x1xf32>
    %37 = vector.broadcast %34 : vector<8x1xf32> to vector<8x32xf32>
    %38 = arith.mulf %19, %37 : vector<8x32xf32>
    %39 = vector.broadcast %36 : vector<8x1xf32> to vector<8x32xf32>
    %40 = arith.addf %38, %39 : vector<8x32xf32>
    %cst_20 = arith.constant 0.00999999977 : f32
    %41 = vector.broadcast %cst_20 : f32 to vector<8x32xf32>
    %42 = arith.mulf %41, %40 : vector<8x32xf32>
    %43 = arith.maximumf %40, %42 : vector<8x32xf32>
    %c0_21 = arith.constant 0 : index
    %c2 = arith.constant 2 : index
    %44 = vector.load %arg8[%c0_21, %c2] : memref<8x8xf32, #tpu.memory_space<vmem>>, vector<4x1xf32>
    %c0_22 = arith.constant 0 : index
    %c3 = arith.constant 3 : index
    %45 = vector.load %arg8[%c0_22, %c3] : memref<8x8xf32, #tpu.memory_space<vmem>>, vector<4x1xf32>
    %c0_23 = arith.constant 0 : index
    %c0_24 = arith.constant 0 : index
    %46 = vector.load %arg2[%c0_23, %c0_24] : memref<16x8xf32, #tpu.memory_space<vmem>>, vector<16x8xf32>
    %cst_25 = arith.constant dense<0.000000e+00> : vector<16x32xf32>
    %47 = tpu.matmul %46, %43, %cst_25 {dimension_numbers = #tpu.dot_dimension_numbers<[1], [0], [0], [1], [0, 0, 1, 1], [], []>} : vector<16x8xf32>, vector<8x32xf32>, vector<16x32xf32> -> vector<16x32xf32>
    %48 = vector.extract_strided_slice %47 {offsets = [0, 0], sizes = [4, 32], strides = [1, 1]} : vector<16x32xf32> to vector<4x32xf32>
    %c0_26 = arith.constant 0 : index
    %c0_27 = arith.constant 0 : index
    %49 = vector.load %arg6[%c0_26, %c0_27] : memref<128x64xf32, #tpu.memory_space<vmem>>, vector<32x64xf32>
    %cst_28 = arith.constant dense<0.000000e+00> : vector<4x64xf32>
    %50 = tpu.matmul %48, %49, %cst_28 {dimension_numbers = #tpu.dot_dimension_numbers<[1], [0], [0], [1], [0, 0, 1, 1], [], []>} : vector<4x32xf32>, vector<32x64xf32>, vector<4x64xf32> -> vector<4x64xf32>
    %51 = vector.extract_strided_slice %47 {offsets = [4, 0], sizes = [4, 32], strides = [1, 1]} : vector<16x32xf32> to vector<4x32xf32>
    %c32_29 = arith.constant 32 : index
    %c0_30 = arith.constant 0 : index
    %52 = vector.load %arg6[%c32_29, %c0_30] : memref<128x64xf32, #tpu.memory_space<vmem>>, vector<32x64xf32>
    %cst_31 = arith.constant dense<0.000000e+00> : vector<4x64xf32>
    %53 = tpu.matmul %51, %52, %cst_31 {dimension_numbers = #tpu.dot_dimension_numbers<[1], [0], [0], [1], [0, 0, 1, 1], [], []>} : vector<4x32xf32>, vector<32x64xf32>, vector<4x64xf32> -> vector<4x64xf32>
    %54 = arith.addf %50, %53 : vector<4x64xf32>
    %55 = vector.extract_strided_slice %47 {offsets = [8, 0], sizes = [4, 32], strides = [1, 1]} : vector<16x32xf32> to vector<4x32xf32>
    %c64 = arith.constant 64 : index
    %c0_32 = arith.constant 0 : index
    %56 = vector.load %arg6[%c64, %c0_32] : memref<128x64xf32, #tpu.memory_space<vmem>>, vector<32x64xf32>
    %cst_33 = arith.constant dense<0.000000e+00> : vector<4x64xf32>
    %57 = tpu.matmul %55, %56, %cst_33 {dimension_numbers = #tpu.dot_dimension_numbers<[1], [0], [0], [1], [0, 0, 1, 1], [], []>} : vector<4x32xf32>, vector<32x64xf32>, vector<4x64xf32> -> vector<4x64xf32>
    %58 = arith.addf %54, %57 : vector<4x64xf32>
    %59 = vector.extract_strided_slice %47 {offsets = [12, 0], sizes = [4, 32], strides = [1, 1]} : vector<16x32xf32> to vector<4x32xf32>
    %c96 = arith.constant 96 : index
    %c0_34 = arith.constant 0 : index
    %60 = vector.load %arg6[%c96, %c0_34] : memref<128x64xf32, #tpu.memory_space<vmem>>, vector<32x64xf32>
    %cst_35 = arith.constant dense<0.000000e+00> : vector<4x64xf32>
    %61 = tpu.matmul %59, %60, %cst_35 {dimension_numbers = #tpu.dot_dimension_numbers<[1], [0], [0], [1], [0, 0, 1, 1], [], []>} : vector<4x32xf32>, vector<32x64xf32>, vector<4x64xf32> -> vector<4x64xf32>
    %62 = arith.addf %58, %61 : vector<4x64xf32>
    %cst_36 = arith.constant dense<0.000000e+00> : vector<4xf32>
    %63 = vector.multi_reduction <add>, %62, %cst_36 [1] : vector<4x64xf32> to vector<4xf32>
    %64 = vector.shape_cast %63 : vector<4xf32> to vector<4x1xf32>
    %cst_37 = arith.constant 6.400000e+01 : f32
    %65 = vector.broadcast %cst_37 : f32 to vector<4x1xf32>
    %66 = arith.divf %64, %65 : vector<4x1xf32>
    %67 = vector.broadcast %66 : vector<4x1xf32> to vector<4x64xf32>
    %68 = arith.subf %62, %67 : vector<4x64xf32>
    %69 = arith.mulf %68, %68 : vector<4x64xf32>
    %cst_38 = arith.constant dense<0.000000e+00> : vector<4xf32>
    %70 = vector.multi_reduction <add>, %69, %cst_38 [1] : vector<4x64xf32> to vector<4xf32>
    %71 = vector.shape_cast %70 : vector<4xf32> to vector<4x1xf32>
    %cst_39 = arith.constant 6.400000e+01 : f32
    %72 = vector.broadcast %cst_39 : f32 to vector<4x1xf32>
    %73 = arith.divf %71, %72 : vector<4x1xf32>
    %cst_40 = arith.constant 9.99999974E-6 : f32
    %74 = vector.broadcast %cst_40 : f32 to vector<4x1xf32>
    %75 = arith.addf %73, %74 : vector<4x1xf32>
    %76 = math.rsqrt %75 : vector<4x1xf32>
    %77 = arith.mulf %44, %76 : vector<4x1xf32>
    %78 = arith.mulf %66, %77 : vector<4x1xf32>
    %79 = arith.subf %45, %78 : vector<4x1xf32>
    %80 = vector.broadcast %77 : vector<4x1xf32> to vector<4x64xf32>
    %81 = arith.mulf %62, %80 : vector<4x64xf32>
    %82 = vector.broadcast %79 : vector<4x1xf32> to vector<4x64xf32>
    %83 = arith.addf %81, %82 : vector<4x64xf32>
    %cst_41 = arith.constant 0.00999999977 : f32
    %84 = vector.broadcast %cst_41 : f32 to vector<4x64xf32>
    %85 = arith.mulf %84, %83 : vector<4x64xf32>
    %86 = arith.maximumf %83, %85 : vector<4x64xf32>
    %c0_42 = arith.constant 0 : index
    %c4 = arith.constant 4 : index
    %87 = vector.load %arg8[%c0_42, %c4] : memref<8x8xf32, #tpu.memory_space<vmem>>, vector<4x1xf32>
    %c0_43 = arith.constant 0 : index
    %c5 = arith.constant 5 : index
    %88 = vector.load %arg8[%c0_43, %c5] : memref<8x8xf32, #tpu.memory_space<vmem>>, vector<4x1xf32>
    %c0_44 = arith.constant 0 : index
    %c0_45 = arith.constant 0 : index
    %89 = vector.load %arg3[%c0_44, %c0_45] : memref<16x4xf32, #tpu.memory_space<vmem>>, vector<16x4xf32>
    %cst_46 = arith.constant dense<0.000000e+00> : vector<16x64xf32>
    %90 = tpu.matmul %89, %86, %cst_46 {dimension_numbers = #tpu.dot_dimension_numbers<[1], [0], [0], [1], [0, 0, 1, 1], [], []>} : vector<16x4xf32>, vector<4x64xf32>, vector<16x64xf32> -> vector<16x64xf32>
    %91 = vector.extract_strided_slice %90 {offsets = [0, 0], sizes = [4, 64], strides = [1, 1]} : vector<16x64xf32> to vector<4x64xf32>
    %c0_47 = arith.constant 0 : index
    %c0_48 = arith.constant 0 : index
    %92 = vector.load %arg7[%c0_47, %c0_48] : memref<256x128xf32, #tpu.memory_space<vmem>>, vector<64x128xf32>
    %cst_49 = arith.constant dense<0.000000e+00> : vector<4x128xf32>
    %93 = tpu.matmul %91, %92, %cst_49 {dimension_numbers = #tpu.dot_dimension_numbers<[1], [0], [0], [1], [0, 0, 1, 1], [], []>} : vector<4x64xf32>, vector<64x128xf32>, vector<4x128xf32> -> vector<4x128xf32>
    %94 = vector.extract_strided_slice %90 {offsets = [4, 0], sizes = [4, 64], strides = [1, 1]} : vector<16x64xf32> to vector<4x64xf32>
    %c64_50 = arith.constant 64 : index
    %c0_51 = arith.constant 0 : index
    %95 = vector.load %arg7[%c64_50, %c0_51] : memref<256x128xf32, #tpu.memory_space<vmem>>, vector<64x128xf32>
    %cst_52 = arith.constant dense<0.000000e+00> : vector<4x128xf32>
    %96 = tpu.matmul %94, %95, %cst_52 {dimension_numbers = #tpu.dot_dimension_numbers<[1], [0], [0], [1], [0, 0, 1, 1], [], []>} : vector<4x64xf32>, vector<64x128xf32>, vector<4x128xf32> -> vector<4x128xf32>
    %97 = arith.addf %93, %96 : vector<4x128xf32>
    %98 = vector.extract_strided_slice %90 {offsets = [8, 0], sizes = [4, 64], strides = [1, 1]} : vector<16x64xf32> to vector<4x64xf32>
    %c128 = arith.constant 128 : index
    %c0_53 = arith.constant 0 : index
    %99 = vector.load %arg7[%c128, %c0_53] : memref<256x128xf32, #tpu.memory_space<vmem>>, vector<64x128xf32>
    %cst_54 = arith.constant dense<0.000000e+00> : vector<4x128xf32>
    %100 = tpu.matmul %98, %99, %cst_54 {dimension_numbers = #tpu.dot_dimension_numbers<[1], [0], [0], [1], [0, 0, 1, 1], [], []>} : vector<4x64xf32>, vector<64x128xf32>, vector<4x128xf32> -> vector<4x128xf32>
    %101 = arith.addf %97, %100 : vector<4x128xf32>
    %102 = vector.extract_strided_slice %90 {offsets = [12, 0], sizes = [4, 64], strides = [1, 1]} : vector<16x64xf32> to vector<4x64xf32>
    %c192 = arith.constant 192 : index
    %c0_55 = arith.constant 0 : index
    %103 = vector.load %arg7[%c192, %c0_55] : memref<256x128xf32, #tpu.memory_space<vmem>>, vector<64x128xf32>
    %cst_56 = arith.constant dense<0.000000e+00> : vector<4x128xf32>
    %104 = tpu.matmul %102, %103, %cst_56 {dimension_numbers = #tpu.dot_dimension_numbers<[1], [0], [0], [1], [0, 0, 1, 1], [], []>} : vector<4x64xf32>, vector<64x128xf32>, vector<4x128xf32> -> vector<4x128xf32>
    %105 = arith.addf %101, %104 : vector<4x128xf32>
    %cst_57 = arith.constant dense<0.000000e+00> : vector<4xf32>
    %106 = vector.multi_reduction <add>, %105, %cst_57 [1] : vector<4x128xf32> to vector<4xf32>
    %107 = vector.shape_cast %106 : vector<4xf32> to vector<4x1xf32>
    %cst_58 = arith.constant 1.280000e+02 : f32
    %108 = vector.broadcast %cst_58 : f32 to vector<4x1xf32>
    %109 = arith.divf %107, %108 : vector<4x1xf32>
    %110 = vector.broadcast %109 : vector<4x1xf32> to vector<4x128xf32>
    %111 = arith.subf %105, %110 : vector<4x128xf32>
    %112 = arith.mulf %111, %111 : vector<4x128xf32>
    %cst_59 = arith.constant dense<0.000000e+00> : vector<4xf32>
    %113 = vector.multi_reduction <add>, %112, %cst_59 [1] : vector<4x128xf32> to vector<4xf32>
    %114 = vector.shape_cast %113 : vector<4xf32> to vector<4x1xf32>
    %cst_60 = arith.constant 1.280000e+02 : f32
    %115 = vector.broadcast %cst_60 : f32 to vector<4x1xf32>
    %116 = arith.divf %114, %115 : vector<4x1xf32>
    %cst_61 = arith.constant 9.99999974E-6 : f32
    %117 = vector.broadcast %cst_61 : f32 to vector<4x1xf32>
    %118 = arith.addf %116, %117 : vector<4x1xf32>
    %119 = math.rsqrt %118 : vector<4x1xf32>
    %120 = arith.mulf %87, %119 : vector<4x1xf32>
    %121 = arith.mulf %109, %120 : vector<4x1xf32>
    %122 = arith.subf %88, %121 : vector<4x1xf32>
    %123 = vector.broadcast %120 : vector<4x1xf32> to vector<4x128xf32>
    %124 = arith.mulf %105, %123 : vector<4x128xf32>
    %125 = vector.broadcast %122 : vector<4x1xf32> to vector<4x128xf32>
    %126 = arith.addf %124, %125 : vector<4x128xf32>
    %cst_62 = arith.constant 0.00999999977 : f32
    %127 = vector.broadcast %cst_62 : f32 to vector<4x128xf32>
    %128 = arith.mulf %127, %126 : vector<4x128xf32>
    %129 = arith.maximumf %126, %128 : vector<4x128xf32>
    %c0_63 = arith.constant 0 : index
    %c0_64 = arith.constant 0 : index
    %130 = vector.load %arg4[%c0_63, %c0_64] : memref<4x4xf32, #tpu.memory_space<vmem>>, vector<4x4xf32>
    %cst_65 = arith.constant dense<0.000000e+00> : vector<4x128xf32>
    %131 = tpu.matmul %130, %129, %cst_65 {dimension_numbers = #tpu.dot_dimension_numbers<[1], [0], [0], [1], [0, 0, 1, 1], [], []>} : vector<4x4xf32>, vector<4x128xf32>, vector<4x128xf32> -> vector<4x128xf32>
    %c0_66 = arith.constant 0 : index
    %c6 = arith.constant 6 : index
    %132 = vector.load %arg8[%c0_66, %c6] : memref<8x8xf32, #tpu.memory_space<vmem>>, vector<4x1xf32>
    %133 = vector.broadcast %132 : vector<4x1xf32> to vector<4x128xf32>
    %134 = arith.addf %131, %133 : vector<4x128xf32>
    %c0_67 = arith.constant 0 : index
    %c0_68 = arith.constant 0 : index
    %135 = vector.load %arg9[%c0_67, %c0_68] : memref<4x128xf32, #tpu.memory_space<vmem>>, vector<4x128xf32>
    tpu.vector_store %arg9[%c0_67, %c0_68], %134 {strides = array<i32>} : memref<4x128xf32, #tpu.memory_space<vmem>>, vector<4x128xf32>,
    return
  }
}

</mosaic_0001>

<bundles_post_ra>
// kernel: tpu_custom_call.1
= control target key start
LH: loop header
LB: loop body
LE: loop exit
PB: predicated region body
PF: predicated region fallthrough
CT: control target
= control target key end

     0   :  { %vm39_vm0 = vcmask 64512   ;;  %s1067_s0 = inlined_call_operand.vmem [shape: f32[8,16], index: 0, kind: input, shape index: {}]   ;;  %s1068_s1 = inlined_call_operand.vmem [shape: f32[32,8], index: 1, kind: input, shape index: {}]   ;;  %s1069_s2 = inlined_call_operand.vmem [shape: f32[16,8], index: 2, kind: input, shape index: {}]   ;;  %s1070_s3 = inlined_call_operand.vmem [shape: f32[16,4], index: 3, kind: input, shape index: {}]   ;;  %s1071_s4 = inlined_call_operand.vmem [shape: f32[4,4], index: 4, kind: input, shape index: {}]   ;;  %s1072_s5 = inlined_call_operand.vmem [shape: f32[64,32], index: 5, kind: input, shape index: {}]   ;;  %s1073_s6 = inlined_call_operand.vmem [shape: f32[128,64], index: 6, kind: input, shape index: {}]   ;;  %s1074_s7 = inlined_call_operand.vmem [shape: f32[256,128], index: 7, kind: input, shape index: {}]   ;;  %s1075_s8 = inlined_call_operand.vmem [shape: f32[8,8], index: 8, kind: input, shape index: {}]   ;;  %s1076_s9 = inlined_call_operand.hbm [shape: f32[4,128], index: 9, kind: output, shape index: {}]  }
   0x1   :  { %v33_v0 = vld [vmem:[%s1067_s0] sm:$0xff]  ;;  %v82_v2 = vld [vmem:[%s1072_s5 + $0x8] sm:$0xff] }
   0x2   :  { %v35_v1 = vld [vmem:[%s1068_s1] sm:$0xff]  ;;  %67 = vmatpush.msra.mxu0 %v33_v0  ;;  %126 = vmatpush.msra.mxu2 %v82_v2 }
   0x3   :  { %687 = vmatmul.msk.f32.vlgmr.msra.gmra.mxu0 %vm39_vm0, %v35_v1 }
   0x4   :  { %14 = vsyncpa [#allocation3], 0  ;;  %v36_v3 = vld [vmem:[%s1068_s1 + $0x8] sm:$0xff]  ;;  %v37_v4 = vld [vmem:[%s1068_s1 + $0x10] sm:$0xff]  ;;  %vm85_vm1 = vcmask 130048   ;;  %vm184_vm2 = vcmask 261120  }
   0x5   :  { %v38_v5 = vld [vmem:[%s1068_s1 + $0x18] sm:$0xff]  ;;  %v81_v6 = vld [vmem:[%s1072_s5] sm:$0xff]  ;;  %v83_v8 = vld [vmem:[%s1072_s5 + $0x10] sm:$0xff]  ;;  %v767_v25 = vmov 32.0   ;;  %v768_v37 = vmov 0   ;;  %s769_s13 = smov 1  }
   0x6   :  { %127 = vmatpush.msra.mxu2 %v81_v6  ;;  %v84_v7 = vld [vmem:[%s1072_s5 + $0x18] sm:$0xff]  ;;  %v133_v9 = vld [vmem:[%s1072_s5 + $0x28] sm:$0xff]  ;;  %v132_v10 = vld [vmem:[%s1072_s5 + $0x20] sm:$0xff]  ;;  %729 = vrcp.f32 %v767_v25  ;;  %722 = vset.pattern.permute.xlu1 %v768_v37  ;;  %v770_v51 = vmov 1   ;;  %vm376_vm7 = vcmask 519168   ;;  %vm435_vm12 = vcmask 1043456  }
   0x7   :  { %103 = vmatpush.msra.mxu1 %v84_v7  ;;  %151 = vmatpush.msra.mxu3 %v133_v9  ;;  %v159_v11 = vld [vmem:[%s1072_s5 + $0x38] sm:$0xff]  ;;  %v158_v12 = vld [vmem:[%s1072_s5 + $0x30] sm:$0xff]  ;;  %v34_v46 = vld [vmem:[%s1075_s8] sm:$0xff]  ;;  %vm428_vm13 = vcmask 31744   ;;  %vm480_vm14 = vcmask 523264   ;;  %s678_s19 = sshll.u32 %s1076_s9, 4  ;;  %s679_s19 = int_to_ptr.hbm [resolvable:$true] %s678_s19 }
   0x8   :  { %723 = vset.pattern.permute.xlu2 %v770_v51  ;;  %v269_v54 = vld [vmem:[%s1073_s6 + $0x18] sm:$0xff]  ;;  %v268_v56 = vld [vmem:[%s1073_s6 + $0x10] sm:$0xff]  ;;  %v267_v58 = vld [vmem:[%s1073_s6 + $0x8] sm:$0xff] }
   0x9   :  { %104 = vmatpush.msra.mxu1 %v83_v8  ;;  %152 = vmatpush.msra.mxu3 %v132_v10  ;;  %v273_v55 = vld [vmem:[%s1073_s6 + $0x38] sm:$0xff]  ;;  %v272_v57 = vld [vmem:[%s1073_s6 + $0x30] sm:$0xff]  ;;  %v235_v1 = vld [vmem:[%s1069_s2] sm:$0xff] }
   0xa   :  { %v236_v2 = vld [vmem:[%s1069_s2 + $0x8] sm:$0xff]  ;;  %v323_v6 = vld [vmem:[%s1073_s6 + $0x58] sm:$0xff]  ;;  %v322_v7 = vld [vmem:[%s1073_s6 + $0x50] sm:$0xff] }
   0xb   :  { %688 = vmatmul.msk.f32.gmra.mxu0 %vm39_vm0, %v36_v3  ;;  %177 = vmatpush.msrb.mxu1 %v159_v11  ;;  %v271_v3 = vld [vmem:[%s1073_s6 + $0x28] sm:$0xff]  ;;  %v351_v8 = vld [vmem:[%s1073_s6 + $0x78] sm:$0xff]  ;;  %v350_v9 = vld [vmem:[%s1073_s6 + $0x70] sm:$0xff] }
   0xc   :  { %v730_v26 = vpop.eup %729  ;;  %290 = vmatpush.msrb.mxu3 %v273_v55  ;;  %v321_v10 = vld [vmem:[%s1073_s6 + $0x48] sm:$0xff]  ;;  %v320_v11 = vld [vmem:[%s1073_s6 + $0x40] sm:$0xff]  ;;  %v469_v55 = vld [vmem:[%s1074_s7 + $0x38] sm:$0xff] }
   0xd   :  { %178 = vmatpush.msrb.mxu1 %v158_v12  ;;  %v189_v27 = vmul.f32 32.0, %v730_v26  ;;  %vm193_vm3 = vweird.f32 %v730_v26  ;;  %v349_v12 = vld [vmem:[%s1073_s6 + $0x68] sm:$0xff] }
   0xe   :  { %291 = vmatpush.msrb.mxu3 %v272_v57  ;;  %v477_v57 = vld [vmem:[%s1074_s7 + $0x78] sm:$0xff] }
   0xf   :  { %v190_v28 = vsub.f32 1.0, %v189_v27  ;;  %491 = vmatpush.msrb.mxu0 %v477_v57 }
  0x10   :  { %292 = vmatpush.msrb.mxu3 %v271_v3 }
  0x11   :  { %v191_v29 = vmul.f32 %v730_v26, %v190_v28 }
  0x13   :  { %689 = vmatmul.msk.f32.gmra.mxu0 %vm39_vm0, %v37_v4  ;;  %v192_v30 = vadd.f32 %v730_v26, %v191_v29  ;;  %v266_v4 = vld [vmem:[%s1073_s6] sm:$0xff] }
  0x15   :  { %v194_v31 = vsel %vm193_vm3, %v730_v26, %v192_v30  ;;  %v771_v26 = vmov 64.0  }
  0x1b   :  { %690 = vmatmul.msk.f32.gmra.mxu0 %vm39_vm0, %v38_v5  ;;  %v270_v5 = vld [vmem:[%s1073_s6 + $0x20] sm:$0xff] }
  0x1c   :  { %293 = vmatpush.msrb.mxu3 %v270_v5  ;;  %v426_v5 = vld [vmem:[%s1070_s3] sm:$0xff] }
  0x80   :  { %v69_v13 = vpop.f32.mrf.mxu0 }
  0x81   :  { %692 = vmatmul.msk.f32.vlgmr.msra.gmra.mxu2 %vm85_vm1, %v69_v13  ;;  %v348_v13 = vld [vmem:[%s1073_s6 + $0x60] sm:$0xff] }
  0x88   :  { %v72_v14 = vpop.f32.mrf.mxu0 }
  0x89   :  { %691 = vmatmul.msk.f32.vlgmr.msra.gmra.mxu1 %vm85_vm1, %v72_v14 }
  0x8a   :  { %312 = vmatpush.msra.mxu1 %v269_v54 }
  0x8c   :  { %313 = vmatpush.msra.mxu1 %v268_v56  ;;  %v468_v56 = vld [vmem:[%s1074_s7 + $0x30] sm:$0xff] }
  0x8e   :  { %314 = vmatpush.msra.mxu1 %v267_v58  ;;  %v467_v58 = vld [vmem:[%s1074_s7 + $0x28] sm:$0xff] }
  0x90   :  { %v75_v15 = vpop.f32.mrf.mxu0  ;;  %315 = vmatpush.msra.mxu1 %v266_v4 }
  0x91   :  { %693 = vmatmul.msk.f32.vlgmr.msra.gmra.mxu3 %vm85_vm1, %v75_v15 }
  0x92   :  { %339 = vmatpush.msra.mxu3 %v323_v6  ;;  %v564_v6 = vld [vmem:[%s1074_s7 + $0xf8] sm:$0xff] }
  0x94   :  { %340 = vmatpush.msra.mxu3 %v322_v7  ;;  %v563_v7 = vld [vmem:[%s1074_s7 + $0xf0] sm:$0xff] }
  0x96   :  { %341 = vmatpush.msra.mxu3 %v321_v10  ;;  %v474_v10 = vld [vmem:[%s1074_s7 + $0x60] sm:$0xff] }
  0x98   :  { %v78_v16 = vpop.f32.mrf.mxu0  ;;  %342 = vmatpush.msra.mxu3 %v320_v11  ;;  %v464_v11 = vld [vmem:[%s1074_s7 + $0x10] sm:$0xff] }
  0x99   :  { %694 = vmatmul.msk.f32.vlgmr.msrb.gmra.mxu1 %vm85_vm1, %v78_v16 }
  0x9a   :  { %367 = vmatpush.msrb.mxu1 %v351_v8  ;;  %v427_v8 = vld [vmem:[%s1070_s3 + $0x8] sm:$0xff] }
  0x9c   :  { %368 = vmatpush.msrb.mxu1 %v350_v9  ;;  %v475_v9 = vld [vmem:[%s1074_s7 + $0x68] sm:$0xff] }
  0x9e   :  { %369 = vmatpush.msrb.mxu1 %v349_v12  ;;  %v531_v12 = vld [vmem:[%s1074_s7 + $0xb0] sm:$0xff] }
  0xa0   :  { %370 = vmatpush.msrb.mxu1 %v348_v13  ;;  %v473_v13 = vld [vmem:[%s1074_s7 + $0x58] sm:$0xff] }
 0x104   :  { %v129_v18 = vpop.f32.mrf.mxu2 }
 0x106   :  { %v106_v17 = vpop.f32.mrf.mxu1 }
 0x107   :  { %v130_v19 = vadd.f32 %v129_v18, %v106_v17 }
 0x114   :  { %v154_v20 = vpop.f32.mrf.mxu3 }
 0x115   :  { %v157_v21 = vadd.f32 %v154_v20, %v130_v19 }
 0x116   :  { %v180_v22 = vpop.f32.mrf.mxu1 }
 0x117   :  { %v183_v23 = vadd.f32 %v180_v22, %v157_v21 }
 0x119   :  { %v185_v24 = vsel %vm184_vm2, %v183_v23, 0.0 }
 0x11a   :  { %186 = vadd.xlane.f32.xlu0 %v185_v24 }
 0x18d   :  { %v187_v32 = vpop.xlane.xlu0 %186 }
 0x18e   :  { %v195_v33 = vmul.f32 %v194_v31, %v187_v32 }
 0x190   :  { %v196_v34 = vsub.f32 %v183_v23, %v195_v33 }
 0x192   :  { %v197_v35 = vmul.f32 %v196_v34, %v196_v34 }
 0x194   :  { %v198_v36 = vsel %vm184_vm2, %v197_v35, 0.0 }
 0x195   :  { %199 = vadd.xlane.f32.xlu0 %v198_v36 }
 0x208   :  { %v200_v38 = vpop.xlane.xlu0 %199 }
 0x209   :  { %v201_v39 = vmul.f32 %v200_v38, %v194_v31  ;;  %v772_v38 = vmov 2  }
 0x20a   :  { %724 = vset.pattern.permute.xlu0 %v772_v38 }
 0x20b   :  { %v202_v40 = vadd.f32 1e-05, %v201_v39 }
 0x20d   :  { %731 = vrsqrt.f32 %v202_v40  ;;  %vm209_vm5 = vweird.f32 %v202_v40 }
 0x20e   :  { %733 = vrcp.f32 %v771_v26  ;;  %v527_v26 = vld [vmem:[%s1074_s7 + $0x90] sm:$0xff] }
 0x213   :  { %v732_v41 = vpop.eup %731 }
 0x214   :  { %v204_v42 = vmul.f32 %v732_v41, %v202_v40  ;;  %vm210_vm4 = vweird.f32 %v732_v41  ;;  %v734_v27 = vpop.eup %733 }
 0x215   :  { %vm211_vm6 = vmor %vm209_vm5, %vm210_vm4  ;;  %v381_v28 = vmul.f32 64.0, %v734_v27  ;;  %vm385_vm8 = vweird.f32 %v734_v27 }
 0x216   :  { %v205_v43 = vmul.f32 %v732_v41, %v204_v42 }
 0x217   :  { %v382_v29 = vsub.f32 1.0, %v381_v28  ;;  %v558_v28 = vld [vmem:[%s1074_s7 + $0xc8] sm:$0xff] }
 0x218   :  { %v206_v44 = vmul.f32 0.5, %v205_v43 }
 0x219   :  { %v383_v30 = vmul.f32 %v734_v27, %v382_v29  ;;  %v525_v29 = vld [vmem:[%s1074_s7 + $0x80] sm:$0xff] }
 0x21a   :  { %v207_v45 = vsub.f32 1.5, %v206_v44 }
 0x21b   :  { %v384_v31 = vadd.f32 %v734_v27, %v383_v30  ;;  %v557_v30 = vld [vmem:[%s1074_s7 + $0xc0] sm:$0xff] }
 0x21c   :  { %v208_v47 = vmul.f32 %v732_v41, %v207_v45 }
 0x21d   :  { %v386_v32 = vsel %vm385_vm8, %v734_v27, %v384_v31  ;;  %v526_v27 = vld [vmem:[%s1074_s7 + $0x88] sm:$0xff] }
 0x21e   :  { %v212_v48 = vsel %vm211_vm6, %v732_v41, %v208_v47  ;;  %v943_v47 = vld [vmem:[%s1075_s8] sm:$0xf] }
 0x21f   :  { %v213_v49 = vmul.f32 %v212_v48, %v34_v46 }
 0x221   :  { %v214_v50 = vmul.f32 %v213_v49, %v195_v33 }
 0x223   :  { %216 = vrot.lane.b32.xlu1 %v214_v50, %s769_s13 }
 0x22b   :  { %222 = vperm.xlu1 %722, %v213_v49  }
 0x295   :  { %v217_v52 = vpop.permute.xlu1 %216 }
 0x296   :  { %v219_v53 = vsub.f32 %v34_v46, %v217_v52  ;;  %v773_v52 = vmov 3  }
 0x297   :  { %725 = vset.pattern.permute.xlu1 %v773_v52 }
 0x298   :  { %228 = vperm.xlu2 %723, %v219_v53  }
 0x29d   :  { %v223_v59 = vpop.permute.xlu1 %222 }
 0x29e   :  { %v225_v60 = vmul.f32 %v223_v59, %v183_v23  ;;  %v476_v59 = vld [vmem:[%s1074_s7 + $0x70] sm:$0xff] }
 0x29f   :  { %492 = vmatpush.msrb.mxu0 %v476_v59 }
 0x2a1   :  { %493 = vmatpush.msrb.mxu0 %v475_v9 }
 0x2a3   :  { %494 = vmatpush.msrb.mxu0 %v474_v10 }
 0x2a5   :  { %495 = vmatpush.msrb.mxu0 %v473_v13 }
 0x2f2   :  { %v229_v61 = vpop.permute.xlu2 %228 }
 0x2f3   :  { %v231_v62 = vadd.f32 %v229_v61, %v225_v60  ;;  %v532_v60 = vld [vmem:[%s1074_s7 + $0xb8] sm:$0xff]  ;;  %v466_v61 = vld [vmem:[%s1074_s7 + $0x20] sm:$0xff] }
 0x2f5   :  { %v232_v63 = vmul.f32 0.01, %v231_v62 }
 0x2f7   :  { %v233_v0 = vmax.f32 %v231_v62, %v232_v63  ;;  %v465_v62 = vld [vmem:[%s1074_s7 + $0x18] sm:$0xff] }
 0x2f9   :  { %258 = vmatpush.msrb.mxu2 %v233_v0 }
 0x2fa   :  { %695 = vmatmul.msk.f32.vlgmr.msrb.gmra.mxu2 %vm39_vm0, %v235_v1 }
 0x302   :  { %696 = vmatmul.msk.f32.gmra.mxu2 %vm39_vm0, %v236_v2 }
 0x37d   :  { %v260_v14 = vpop.f32.mrf.mxu2 }
 0x37e   :  { %v275_v15 = vrot.slane %v260_v14, 4  ;;  %698 = vmatmul.msk.f32.vlgmr.msra.gmra.mxu1 %vm184_vm2, %v260_v14  ;;  %v463_v14 = vld [vmem:[%s1074_s7 + $0x8] sm:$0xff] }
 0x37f   :  { %544 = vmatpush.msra.mxu1 %v532_v60 }
 0x380   :  { %697 = vmatmul.msk.f32.vlgmr.msrb.gmra.mxu3 %vm184_vm2, %v275_v15  ;;  %v530_v15 = vld [vmem:[%s1074_s7 + $0xa8] sm:$0xff] }
 0x381   :  { %513 = vmatpush.msrb.mxu3 %v469_v55  ;;  %545 = vmatpush.msra.mxu1 %v531_v12 }
 0x383   :  { %514 = vmatpush.msrb.mxu3 %v468_v56  ;;  %546 = vmatpush.msra.mxu1 %v530_v15  ;;  %v775_v56 = vmov 4   ;;  %v638_v15 = vld [vmem:[%s1071_s4] sm:$0xf] }
 0x385   :  { %v263_v16 = vpop.f32.mrf.mxu2  ;;  %515 = vmatpush.msrb.mxu3 %v467_v58 }
 0x386   :  { %v352_v17 = vrot.slane %v263_v16, 4 }
 0x387   :  { %516 = vmatpush.msrb.mxu3 %v466_v61 }
 0x388   :  { %699 = vmatmul.msk.f32.vlgmr.msra.gmra.mxu3 %vm184_vm2, %v263_v16  ;;  %700 = vmatmul.msk.f32.vlgmr.msrb.gmra.mxu1 %vm184_vm2, %v352_v17  ;;  %v472_v16 = vld [vmem:[%s1074_s7 + $0x50] sm:$0xff]  ;;  %v562_v17 = vld [vmem:[%s1074_s7 + $0xe8] sm:$0xff] }
 0x389   :  { %517 = vmatpush.msrb.mxu3 %v465_v62  ;;  %496 = vmatpush.msrb.mxu0 %v472_v16 }
 0x38b   :  { %518 = vmatpush.msrb.mxu3 %v464_v11 }
 0x38d   :  { %519 = vmatpush.msrb.mxu3 %v463_v14 }
 0x3fb   :  { %v317_v19 = vpop.f32.mrf.mxu1 }
 0x403   :  { %v295_v18 = vpop.f32.mrf.mxu3 }
 0x404   :  { %v318_v20 = vadd.f32 %v317_v19, %v295_v18  ;;  %v462_v18 = vld [vmem:[%s1074_s7] sm:$0xff] }
 0x405   :  { %v372_v23 = vpop.f32.mrf.mxu1  ;;  %v529_v19 = vld [vmem:[%s1074_s7 + $0xa0] sm:$0xff]  ;;  %520 = vmatpush.msrb.mxu3 %v462_v18 }
 0x406   :  { %547 = vmatpush.msra.mxu1 %v529_v19 }
 0x40b   :  { %v344_v21 = vpop.f32.mrf.mxu3 }
 0x40c   :  { %v347_v22 = vadd.f32 %v344_v21, %v318_v20  ;;  %v471_v20 = vld [vmem:[%s1074_s7 + $0x48] sm:$0xff]  ;;  %v561_v21 = vld [vmem:[%s1074_s7 + $0xe0] sm:$0xff] }
 0x40d   :  { %497 = vmatpush.msrb.mxu0 %v471_v20 }
 0x40e   :  { %v375_v24 = vadd.f32 %v372_v23, %v347_v22  ;;  %v560_v22 = vld [vmem:[%s1074_s7 + $0xd8] sm:$0xff] }
 0x40f   :  { %v528_v23 = vld [vmem:[%s1074_s7 + $0x98] sm:$0xff] }
 0x410   :  { %v377_v25 = vsel %vm376_vm7, %v375_v24, 0.0  ;;  %548 = vmatpush.msra.mxu1 %v528_v23 }
 0x411   :  { %378 = vadd.xlane.f32.xlu2 %v377_v25  ;;  %v559_v25 = vld [vmem:[%s1074_s7 + $0xd0] sm:$0xff] }
 0x412   :  { %549 = vmatpush.msra.mxu1 %v527_v26 }
 0x414   :  { %550 = vmatpush.msra.mxu1 %v526_v27 }
 0x416   :  { %551 = vmatpush.msra.mxu1 %v525_v29 }
 0x484   :  { %v379_v33 = vpop.xlane.xlu2 %378 }
 0x485   :  { %v387_v34 = vmul.f32 %v386_v32, %v379_v33 }
 0x487   :  { %v388_v35 = vsub.f32 %v375_v24, %v387_v34 }
 0x489   :  { %v389_v36 = vmul.f32 %v388_v35, %v388_v35 }
 0x48b   :  { %v390_v37 = vsel %vm376_vm7, %v389_v36, 0.0 }
 0x48c   :  { %391 = vadd.xlane.f32.xlu0 %v390_v37 }
 0x4ff   :  { %v392_v39 = vpop.xlane.xlu0 %391 }
 0x500   :  { %v393_v40 = vmul.f32 %v392_v39, %v386_v32 }
 0x502   :  { %v394_v41 = vadd.f32 1e-05, %v393_v40 }
 0x504   :  { %735 = vrsqrt.f32 %v394_v41  ;;  %vm401_vm10 = vweird.f32 %v394_v41 }
 0x50a   :  { %v736_v42 = vpop.eup %735 }
 0x50b   :  { %v396_v43 = vmul.f32 %v736_v42, %v394_v41  ;;  %vm402_vm9 = vweird.f32 %v736_v42 }
 0x50c   :  { %vm403_vm11 = vmor %vm401_vm10, %vm402_vm9 }
 0x50d   :  { %v397_v44 = vmul.f32 %v736_v42, %v396_v43  ;;  %v774_v43 = vmov 128.0  }
 0x50e   :  { %737 = vrcp.f32 %v774_v43 }
 0x50f   :  { %v398_v45 = vmul.f32 0.5, %v397_v44 }
 0x511   :  { %v399_v46 = vsub.f32 1.5, %v398_v45 }
 0x513   :  { %v400_v48 = vmul.f32 %v736_v42, %v399_v46 }
 0x514   :  { %v738_v44 = vpop.eup %737 }
 0x515   :  { %v404_v49 = vsel %vm403_vm11, %v736_v42, %v400_v48  ;;  %v593_v45 = vmul.f32 128.0, %v738_v44  ;;  %vm597_vm15 = vweird.f32 %v738_v44 }
 0x516   :  { %v405_v50 = vmul.f32 %v404_v49, %v943_v47 }
 0x517   :  { %v594_v46 = vsub.f32 1.0, %v593_v45 }
 0x518   :  { %414 = vperm.xlu0 %724, %v405_v50   ;;  %v406_v51 = vmul.f32 %v405_v50, %v387_v34 }
 0x519   :  { %v595_v48 = vmul.f32 %v738_v44, %v594_v46 }
 0x51a   :  { %408 = vrot.lane.b32.xlu1 %v406_v51, %s769_s13 }
 0x51b   :  { %v596_v49 = vadd.f32 %v738_v44, %v595_v48 }
 0x51d   :  { %v598_v50 = vsel %vm597_vm15, %v738_v44, %v596_v49 }
 0x520   :  { %726 = vset.pattern.permute.xlu0 %v775_v56 }
 0x58a   :  { %v415_v63 = vpop.permute.xlu0 %414 }
 0x58b   :  { %v417_v0 = vmul.f32 %v415_v63, %v375_v24  ;;  %v470_v24 = vld [vmem:[%s1074_s7 + $0x40] sm:$0xff] }
 0x58c   :  { %v409_v53 = vpop.permute.xlu1 %408  ;;  %498 = vmatpush.msrb.mxu0 %v470_v24 }
 0x58d   :  { %v411_v54 = vsub.f32 %v943_v47, %v409_v53 }
 0x58f   :  { %420 = vperm.xlu1 %725, %v411_v54  }
 0x601   :  { %v421_v1 = vpop.permute.xlu1 %420 }
 0x602   :  { %v423_v2 = vadd.f32 %v421_v1, %v417_v0 }
 0x604   :  { %v424_v3 = vmul.f32 0.01, %v423_v2 }
 0x606   :  { %v425_v4 = vmax.f32 %v423_v2, %v424_v3 }
 0x608   :  { %701 = vmatpush.msk.msra.mxu2 %vm435_vm12, %v425_v4 }
 0x609   :  { %702 = vmatmul.msk.f32.vlgmr.msra.gmra.mxu2 %vm428_vm13, %v426_v5  ;;  %v776_v5 = vmov 5  }
 0x60a   :  { %576 = vmatpush.msrb.mxu2 %v564_v6  ;;  %727 = vset.pattern.permute.xlu1 %v776_v5 }
 0x60c   :  { %577 = vmatpush.msrb.mxu2 %v563_v7 }
 0x60e   :  { %578 = vmatpush.msrb.mxu2 %v562_v17 }
 0x610   :  { %579 = vmatpush.msrb.mxu2 %v561_v21 }
 0x611   :  { %703 = vmatmul.msk.f32.gmra.mxu2 %vm428_vm13, %v427_v8  ;;  %v777_v8 = vmov 6  }
 0x612   :  { %580 = vmatpush.msrb.mxu2 %v560_v22 }
 0x614   :  { %581 = vmatpush.msrb.mxu2 %v559_v25 }
 0x616   :  { %582 = vmatpush.msrb.mxu2 %v558_v28 }
 0x618   :  { %583 = vmatpush.msrb.mxu2 %v557_v30 }
 0x68c   :  { %v456_v31 = vpop.f32.mrf.mxu2 }
 0x68d   :  { %v479_v32 = vrot.slane %v456_v31, 4  ;;  %705 = vmatmul.msk.f32.vlgmr.msrb.gmra.mxu3 %vm480_vm14, %v456_v31 }
 0x68f   :  { %704 = vmatmul.msk.f32.vlgmr.msrb.gmra.mxu0 %vm480_vm14, %v479_v32 }
 0x694   :  { %v459_v33 = vpop.f32.mrf.mxu2 }
 0x695   :  { %v565_v34 = vrot.slane %v459_v33, 4  ;;  %706 = vmatmul.msk.f32.vlgmr.msra.gmra.mxu1 %vm480_vm14, %v459_v33 }
 0x697   :  { %707 = vmatmul.msk.f32.vlgmr.msrb.gmra.mxu2 %vm480_vm14, %v565_v34 }
 0x70c   :  { %v500_v36 = vpop.f32.mrf.mxu0 }
 0x710   :  { %v522_v35 = vpop.f32.mrf.mxu3 }
 0x711   :  { %v523_v37 = vadd.f32 %v522_v35, %v500_v36 }
 0x712   :  { %v553_v38 = vpop.f32.mrf.mxu1 }
 0x713   :  { %v556_v39 = vadd.f32 %v553_v38, %v523_v37 }
 0x71a   :  { %v585_v40 = vpop.f32.mrf.mxu2 }
 0x71b   :  { %v588_v41 = vadd.f32 %v585_v40, %v556_v39 }
 0x71d   :  { %v589_v42 = vsel %vm435_vm12, %v588_v41, 0.0 }
 0x71e   :  { %590 = vadd.xlane.f32.xlu1 %v589_v42 }
 0x791   :  { %v591_v51 = vpop.xlane.xlu1 %590 }
 0x792   :  { %v599_v52 = vmul.f32 %v598_v50, %v591_v51 }
 0x794   :  { %v600_v53 = vsub.f32 %v588_v41, %v599_v52 }
 0x796   :  { %v601_v54 = vmul.f32 %v600_v53, %v600_v53 }
 0x798   :  { %v602_v55 = vsel %vm435_vm12, %v601_v54, 0.0 }
 0x799   :  { %603 = vadd.xlane.f32.xlu2 %v602_v55 }
 0x80c   :  { %v604_v57 = vpop.xlane.xlu2 %603 }
 0x80d   :  { %v605_v58 = vmul.f32 %v604_v57, %v598_v50 }
 0x80f   :  { %v606_v59 = vadd.f32 1e-05, %v605_v58 }
 0x811   :  { %739 = vrsqrt.f32 %v606_v59  ;;  %vm613_vm1 = vweird.f32 %v606_v59 }
 0x817   :  { %v740_v60 = vpop.eup %739 }
 0x818   :  { %v608_v61 = vmul.f32 %v740_v60, %v606_v59  ;;  %vm614_vm0 = vweird.f32 %v740_v60 }
 0x819   :  { %vm615_vm2 = vmor %vm613_vm1, %vm614_vm0 }
 0x81a   :  { %v609_v62 = vmul.f32 %v740_v60, %v608_v61 }
 0x81c   :  { %v610_v63 = vmul.f32 0.5, %v609_v62 }
 0x81e   :  { %v611_v0 = vsub.f32 1.5, %v610_v63 }
 0x820   :  { %v612_v1 = vmul.f32 %v740_v60, %v611_v0 }
 0x822   :  { %v616_v2 = vsel %vm615_vm2, %v740_v60, %v612_v1 }
 0x823   :  { %v617_v3 = vmul.f32 %v616_v2, %v943_v47 }
 0x825   :  { %626 = vperm.xlu0 %726, %v617_v3   ;;  %v618_v4 = vmul.f32 %v617_v3, %v599_v52 }
 0x827   :  { %620 = vrot.lane.b32.xlu2 %v618_v4, %s769_s13  ;;  %s778_s13 = smov [#allocation2]  }
 0x828   :  { %s676_s0 = sshll.u32 %s778_s13, 4  ;;  %s677_s0 = int_to_ptr.vmem [resolvable:$true] %s676_s0 }
 0x82d   :  { %728 = vset.pattern.permute.xlu0 %v777_v8 }
 0x82e   :  { %641 = vperm.xlu0 %728, %v943_v47  }
 0x881   :  { %v621_v6 = vpop.permute.xlu2 %620 }
 0x882   :  { %v623_v7 = vsub.f32 %v943_v47, %v621_v6 }
 0x884   :  { %632 = vperm.xlu1 %727, %v623_v7  }
 0x897   :  { %v627_v9 = vpop.permute.xlu0 %626 }
 0x898   :  { %v629_v10 = vmul.f32 %v627_v9, %v588_v41 }
 0x8a0   :  { %v642_v16 = vpop.permute.xlu0 %641 }
 0x8f6   :  { %v633_v11 = vpop.permute.xlu1 %632 }
 0x8f7   :  { %v635_v12 = vadd.f32 %v633_v11, %v629_v10 }
 0x8f9   :  { %v636_v13 = vmul.f32 0.01, %v635_v12 }
 0x8fb   :  { %v637_v14 = vmax.f32 %v635_v12, %v636_v13 }
 0x8fd   :  { %708 = vmatpush.msk.msra.mxu0 %vm435_vm12, %v637_v14 }
 0x8fe   :  { %709 = vmatmul.msk.f32.vlgmr.msra.gmra.mxu0 %vm428_vm13, %v638_v15 }
 0x97b   :  { %v667_v47 = vpop.f32.mrf.mxu0 }
 0x97c   :  { %v668_v17 = vadd.f32 %v667_v47, %v642_v16 }
 0x97e   :  { %670 = vst [vmem:[#allocation2] sm:$0xf] %v668_v17 }
 0x97f   :  { %681 = dma.vmem_to_hbm [thread:$0]  %s677_s0, 64, %s679_s19, [#allocation3]  }
 0x980   :  { %765 = dma.done.wait [#allocation3], 64  }
 0x981   :  { %766 = vsyncadd [#allocation3], 4294967232 }
 0x982   :  { %686 = vsyncpa [#allocation3], 1 }

</bundles_post_ra>
